<compile_context>
chip_gen: v6e
topology: v6e:2x2x1
jax: 0.10.0
libtpu: 0.0.40
codegen_flags: <defaults>
</compile_context>

<pallas_src>
import jax
import jax.numpy as jnp
from jax.experimental import pallas as pl
from jax.experimental.pallas import tpu as pltpu


_DEFAULT_BUFFER_BUDGET = 16 * 1024 * 1024   # total bytes for double-buffered input tiles
_VMEM_LIMIT_BYTES = 32 * 1024 * 1024        # scoped VMEM; safe on v5e/v6e/v7x


def _as_2d(x: jax.Array) -> jax.Array:
    if x.ndim == 2:
        return x
    if x.ndim <= 1:
        return x.reshape(1, -1)
    return x.reshape(-1, x.shape[-1])


def _tile_pow(x, p):
    """|x|^p elementwise in f32 (p is a static Python number)."""
    x = x.astype(jnp.float32)
    if p == 1:
        return jnp.abs(x)
    if p == 2:
        return x * x
    return jnp.abs(x) ** p


def _make_single_tile_kernel(p, n_in):
    """Whole array fits in one VMEM block per input: reduce each block once."""

    def kernel(*refs):
        x_refs = refs[:n_in]
        out_ref = refs[n_in]  # SMEM (1, n_in)
        for idx in range(n_in):
            out_ref[0, idx] = jnp.sum(_tile_pow(x_refs[idx][...], p))

    return kernel


def _make_tiled_kernel(p, n_in, tm, C, rem):
    """Streaming row-tile reduction with a (8, C) VMEM vector accumulator per input.

    rem == 0  -> all tiles full; no masking code is emitted.
    rem  > 0  -> only the last grid step masks rows >= rem (the partial tile).
    """

    def kernel(*refs):
        x_refs = refs[:n_in]
        out_ref = refs[n_in]              # SMEM (1, n_in)
        acc_refs = refs[n_in + 1:]        # n_in x VMEM (8, C) f32
        step = pl.program_id(0)
        last = pl.num_programs(0) - 1

        @pl.when(step == 0)
        def _():
            for acc in acc_refs:
                acc[...] = jnp.zeros_like(acc)

        def accumulate(row_mask):
            for x_ref, acc in zip(x_refs, acc_refs):
                v = _tile_pow(x_ref[...], p)
                if row_mask is not None:
                    v = jnp.where(row_mask, v, 0.0)
                # Sublane fold: (tm, C) -> (tm//8, 8, C) -> sum over leading axis.
                # Pure VPU elementwise adds; no per-step cross-lane reduce.
                acc[...] += jnp.sum(v.reshape(tm // 8, 8, C), axis=0)

        if rem == 0:
            accumulate(None)
        else:
            @pl.when(step != last)
            def _():
                accumulate(None)

            @pl.when(step == last)
            def _():
                rows = jax.lax.broadcasted_iota(jnp.int32, (tm, C), 0)
                accumulate(rows < rem)

        @pl.when(step == last)
        def _():
            for idx in range(n_in):
                out_ref[0, idx] = jnp.sum(acc_refs[idx][...])

    return kernel


def _abs_pow_sums(arrays, p, buffer_budget_bytes=_DEFAULT_BUFFER_BUDGET):
    """Returns a (len(arrays),) f32 vector of sum(|x|^p) per 2-D array.

    All arrays must share the same shape and dtype (they share one grid).
    """
    n_in = len(arrays)
    R, C = arrays[0].shape
    itemsize = arrays[0].dtype.itemsize

    # Per-block byte budget: double-buffered, n_in inputs share the budget.
    per_block = max(1, buffer_budget_bytes // (2 * n_in))
    tm = per_block // (C * itemsize)

    if tm >= R:
        # Single full-array block per input (also the tiny-weights fast path).
        kernel = _make_single_tile_kernel(p, n_in)
        grid = (1,)
        in_specs = [pl.BlockSpec((R, C), lambda i: (0, 0)) for _ in range(n_in)]
        scratch_shapes = []
    else:
        # Multiple of 32 keeps sublane packing friendly for f32/bf16/int8.
        tm = (tm // 32) * 32 if tm >= 32 else max(8, (tm // 8) * 8)
        n_tiles = -(-R // tm)          # cdiv
        rem = R % tm                   # rows in the partial last tile (0 => aligned)
        kernel = _make_tiled_kernel(p, n_in, tm, C, rem)
        grid = (n_tiles,)
        in_specs = [pl.BlockSpec((tm, C), lambda i: (i, 0)) for _ in range(n_in)]
        scratch_shapes = [pltpu.VMEM((8, C), jnp.float32) for _ in range(n_in)]

    out = pl.pallas_call(
        kernel,
        out_shape=jax.ShapeDtypeStruct((1, n_in), jnp.float32),
        grid_spec=pltpu.PrefetchScalarGridSpec(
            num_scalar_prefetch=0,
            grid=grid,
            in_specs=in_specs,
            out_specs=pl.BlockSpec((1, n_in), lambda i: (0, 0),
                                   memory_space=pltpu.MemorySpace.SMEM),
            scratch_shapes=scratch_shapes,
        ),
        compiler_params=pltpu.CompilerParams(
            dimension_semantics=("arbitrary",),      # reduction axis
            vmem_limit_bytes=_VMEM_LIMIT_BYTES,
        ),
    )(*arrays)
    return out[0]


def weight_norm_loss(weight_e: jax.Array, weight_i: jax.Array, norm: int = 1,
                     buffer_budget_bytes: int = _DEFAULT_BUFFER_BUDGET) -> jax.Array:
    """JAX/Pallas equivalent of WeightNormLoss(norm).forward(weight_e, weight_i)."""
    e2 = _as_2d(jnp.asarray(weight_e))
    i2 = _as_2d(jnp.asarray(weight_i))

    if e2.shape == i2.shape and e2.dtype == i2.dtype:
        # Fused: one pallas_call streams both weight matrices.
        sums = _abs_pow_sums([e2, i2], norm, buffer_budget_bytes)
        se, si = sums[0], sums[1]
    else:
        se = _abs_pow_sums([e2], norm, buffer_budget_bytes)[0]
        si = _abs_pow_sums([i2], norm, buffer_budget_bytes)[0]

    if norm == 1:
        return se + si
    inv_p = 1.0 / norm
    return se ** inv_p + si ** inv_p


if __name__ == "__main__":
    # Deterministic synthetic "weights": excitatory / inhibitory recurrent
    # matrices of a small RNN, hidden=32.
    key = jax.random.PRNGKey(0)
    ke, ki = jax.random.split(key)
    hidden = 32
    weight_e = jax.random.normal(ke, (hidden, hidden), dtype=jnp.float32)
    weight_i = jax.random.normal(ki, (hidden, hidden), dtype=jnp.float32)

    # Default module config: norm=1 (L1 loss). Single fused call, single-tile path.
    loss = jax.block_until_ready(weight_norm_loss(weight_e, weight_i, norm=1))
    ref = jnp.sum(jnp.abs(weight_e)) + jnp.sum(jnp.abs(weight_i))
    assert jnp.allclose(loss, ref, rtol=1e-5, atol=1e-5), (loss, ref)

    # L2 path.
    loss2 = jax.block_until_ready(weight_norm_loss(weight_e, weight_i, norm=2))
    ref2 = jnp.sqrt(jnp.sum(weight_e ** 2)) + jnp.sqrt(jnp.sum(weight_i ** 2))
    assert jnp.allclose(loss2, ref2, rtol=1e-5, atol=1e-5), (loss2, ref2)

    # Exercise the streaming tiled path with a masked (row-unaligned) last tile
    # by forcing a small tile budget: tm=32 over 100 rows -> 4 tiles, rem=4.
    kb, kb2 = jax.random.split(ki)
    we_big = jax.random.normal(kb, (100, 128), dtype=jnp.float32)
    wi_big = jax.random.normal(kb2, (100, 128), dtype=jnp.float32)
    loss3 = jax.block_until_ready(
        weight_norm_loss(we_big, wi_big, norm=1, buffer_budget_bytes=64 * 1024))
    ref3 = jnp.sum(jnp.abs(we_big)) + jnp.sum(jnp.abs(wi_big))
    assert jnp.allclose(loss3, ref3, rtol=1e-5, atol=1e-5), (loss3, ref3)

    print("KERNEL_OK")
</pallas_src>

<mosaic_0001>
module attributes {stable_mosaic.version = 11 : i64} {
  func.func @kernel(%arg0: i32, %arg1: memref<32x32xf32, #tpu.memory_space<vmem>>, %arg2: memref<32x32xf32, #tpu.memory_space<vmem>>, %arg3: memref<1x2xf32, #tpu.memory_space<smem>>) attributes {dimension_semantics = [#tpu.dimension_semantics<arbitrary>], iteration_bounds = array<i64: 1>, scalar_prefetch = 0 : i64, scratch_operands = 0 : i64, tpu.core_type = #tpu.core_type<tc>, window_params = [{pipeline_mode = #tpu.pipeline_mode<synchronous>, transform_indices = @transform_0, window_bounds = array<i64: 32, 32>}, {pipeline_mode = #tpu.pipeline_mode<synchronous>, transform_indices = @transform_1, window_bounds = array<i64: 32, 32>}, {transform_indices = @transform_2, window_bounds = array<i64: 1, 2>}]} {
    %c0 = arith.constant 0 : index
    %c0_0 = arith.constant 0 : index
    %0 = vector.load %arg1[%c0, %c0_0] : memref<32x32xf32, #tpu.memory_space<vmem>>, vector<32x32xf32>
    %1 = math.absf %0 : vector<32x32xf32>
    %2 = vector.shape_cast %1 : vector<32x32xf32> to vector<1x32x32xf32>
    %cst = arith.constant dense<0.000000e+00> : vector<1xf32>
    %3 = vector.multi_reduction <add>, %2, %cst [1, 2] : vector<1x32x32xf32> to vector<1xf32>
    %4 = vector.shape_cast %3 : vector<1xf32> to vector<1x1x1xf32>
    %5 = vector.extract %4[0, 0, 0] : f32 from vector<1x1x1xf32>
    %c0_1 = arith.constant 0 : index
    %c0_2 = arith.constant 0 : index
    %6 = memref.load %arg3[%c0_1, %c0_2] : memref<1x2xf32, #tpu.memory_space<smem>>
    memref.store %5, %arg3[%c0_1, %c0_2] : memref<1x2xf32, #tpu.memory_space<smem>>
    %c0_3 = arith.constant 0 : index
    %c0_4 = arith.constant 0 : index
    %7 = vector.load %arg2[%c0_3, %c0_4] : memref<32x32xf32, #tpu.memory_space<vmem>>, vector<32x32xf32>
    %8 = math.absf %7 : vector<32x32xf32>
    %9 = vector.shape_cast %8 : vector<32x32xf32> to vector<1x32x32xf32>
    %cst_5 = arith.constant dense<0.000000e+00> : vector<1xf32>
    %10 = vector.multi_reduction <add>, %9, %cst_5 [1, 2] : vector<1x32x32xf32> to vector<1xf32>
    %11 = vector.shape_cast %10 : vector<1xf32> to vector<1x1x1xf32>
    %12 = vector.extract %11[0, 0, 0] : f32 from vector<1x1x1xf32>
    %c0_6 = arith.constant 0 : index
    %c1 = arith.constant 1 : index
    %13 = memref.load %arg3[%c0_6, %c1] : memref<1x2xf32, #tpu.memory_space<smem>>
    memref.store %12, %arg3[%c0_6, %c1] : memref<1x2xf32, #tpu.memory_space<smem>>
    return
  }
  func.func @transform_0(%arg0: i32) -> (i32, i32) {
    %c0_i32 = arith.constant 0 : i32
    %c0_i32_0 = arith.constant 0 : i32
    %c0_i32_1 = arith.constant 0 : i32
    return %c0_i32, %c0_i32_0 : i32, i32
  }
  func.func @transform_1(%arg0: i32) -> (i32, i32) {
    %c0_i32 = arith.constant 0 : i32
    %c0_i32_0 = arith.constant 0 : i32
    %c0_i32_1 = arith.constant 0 : i32
    return %c0_i32, %c0_i32_0 : i32, i32
  }
  func.func @transform_2(%arg0: i32) -> (i32, i32) {
    %c0_i32 = arith.constant 0 : i32
    %c0_i32_0 = arith.constant 0 : i32
    %c0_i32_1 = arith.constant 0 : i32
    return %c0_i32, %c0_i32_0 : i32, i32
  }
}

</mosaic_0001>

<bundles_post_ra>
// kernel: tpu_custom_call.1
= control target key start
LH: loop header
LB: loop body
LE: loop exit
PB: predicated region body
PF: predicated region fallthrough
CT: control target
= control target key end

     0   :  { %7 = vsyncpa [#allocation3], 0  ;;  %s208_s0 = inlined_call_operand.hbm [shape: f32[32,32], index: 0, kind: input, shape index: {}]   ;;  %s209_s1 = inlined_call_operand.hbm [shape: f32[32,32], index: 1, kind: input, shape index: {}]   ;;  %s210_s2 = inlined_call_operand.hbm [shape: f32[1,2], index: 2, kind: output, shape index: {}]  }
   0x1   :  { %8 = vsyncpa [#allocation6], 0 }
   0x2   :  { %9 = vsyncpa [#allocation4], 0  ;;  %s171_s9 = smov [#allocation2]  }
   0x3   :  { %s15_s10 = sshll.u32 %s171_s9, 4  ;;  %s16_s10 = int_to_ptr.vmem [resolvable:$true] %s15_s10 }
   0x4   :  { %s125_s11 = scalar_lea.vmem %s16_s10, 512  ;;  %p130_p1 = scmp.lt.s32.totalorder %s16_s10, %s16_s10 }
   0x5   :  { %p126_p0 = scmp.ne.s32.totalorder %s16_s10, %s125_s11  ;;  %p131_p2 = scmp.lt.s32.totalorder %s125_s11, %s125_s11 }
   0x7   :  { %p132_p3 = por %p131_p2, %p130_p1 }
   0x9   :  { %p133_p4 = pnand %p132_p3, %p126_p0 }
   0xb   :  { %136 = shalt.err (!%p133_p4)
}
   0xc   :  { %s172_s12 = smov 128   ;;  %s173_s13 = smov 8  }
   0xd   :  { %21 = dma.hbm_to_vmem [thread:$0]  %s208_s0, 512, %s16_s10, [#allocation3], %s172_s12, %s172_s12, %s173_s13  }
   0xe   :  { %s174_s16 = smov [#allocation5]  }
   0xf   :  { %s27_s17 = sshll.u32 %s174_s16, 4  ;;  %s28_s17 = int_to_ptr.vmem [resolvable:$true] %s27_s17 }
  0x10   :  { %s145_s18 = scalar_lea.vmem %s28_s17, 512  ;;  %p150_p6 = scmp.lt.s32.totalorder %s28_s17, %s28_s17 }
  0x11   :  { %p146_p5 = scmp.ne.s32.totalorder %s28_s17, %s145_s18  ;;  %p151_p7 = scmp.lt.s32.totalorder %s145_s18, %s145_s18 }
  0x13   :  { %p152_p8 = por %p151_p7, %p150_p6 }
  0x15   :  { %p153_p9 = pnand %p152_p8, %p146_p5 }
  0x17   :  { %156 = shalt.err (!%p153_p9)
}
  0x18   :  { %33 = dma.hbm_to_vmem [thread:$0]  %s209_s1, 512, %s28_s17, [#allocation6], %s172_s12, %s172_s12, %s173_s13  }
  0x19   :  { %165 = dma.done.wait [#allocation3], 512  }
  0x1a   :  { %166 = vsyncadd [#allocation3], 4294966784 }
  0x1b   :  { %167 = dma.done.wait [#allocation6], 512  }
  0x1c   :  { %168 = vsyncadd [#allocation6], 4294966784  ;;  %v40_v0 = vld [vmem:[#allocation2] sm:$0xff]  ;;  %v41_v1 = vld [vmem:[#allocation2 + $0x8] sm:$0xff]  ;;  %vm48_vm0 = vcmask 261120   ;;  %s175_s21 = smov [#allocation7]  }
  0x1d   :  { %v42_v2 = vld [vmem:[#allocation2 + $0x10] sm:$0xff]  ;;  %v43_v3 = vld [vmem:[#allocation2 + $0x18] sm:$0xff]  ;;  %v44_v4 = vand.u32 2147483647, %v40_v0  ;;  %v45_v5 = vand.u32 2147483647, %v41_v1 }
  0x1e   :  { %v67_v6 = vld [vmem:[#allocation5] sm:$0xff]  ;;  %v46_v7 = vand.u32 2147483647, %v42_v2  ;;  %v47_v8 = vand.u32 2147483647, %v43_v3  ;;  %v68_v9 = vld [vmem:[#allocation5 + $0x8] sm:$0xff] }
  0x1f   :  { %v69_v10 = vld [vmem:[#allocation5 + $0x10] sm:$0xff]  ;;  %v49_v11 = vsel %vm48_vm0, %v44_v4, 0.0  ;;  %v50_v12 = vsel %vm48_vm0, %v45_v5, 0.0  ;;  %v70_v13 = vld [vmem:[#allocation5 + $0x18] sm:$0xff]  ;;  %v71_v14 = vand.u32 2147483647, %v67_v6 }
  0x20   :  { %v51_v15 = vadd.f32 %v50_v12, %v49_v11  ;;  %v52_v16 = vsel %vm48_vm0, %v46_v7, 0.0  ;;  %v72_v17 = vand.u32 2147483647, %v68_v9  ;;  %v54_v18 = vsel %vm48_vm0, %v47_v8, 0.0 }
  0x21   :  { %v73_v19 = vand.u32 2147483647, %v69_v10  ;;  %v74_v20 = vand.u32 2147483647, %v70_v13  ;;  %v75_v21 = vsel %vm48_vm0, %v71_v14, 0.0 }
  0x22   :  { %v53_v22 = vadd.f32 %v52_v16, %v51_v15  ;;  %v76_v23 = vsel %vm48_vm0, %v72_v17, 0.0 }
  0x23   :  { %v77_v24 = vadd.f32 %v76_v23, %v75_v21  ;;  %v78_v25 = vsel %vm48_vm0, %v73_v19, 0.0  ;;  %v80_v27 = vsel %vm48_vm0, %v74_v20, 0.0 }
  0x24   :  { %v55_v26 = vadd.f32 %v54_v18, %v53_v22 }
  0x25   :  { %v79_v28 = vadd.f32 %v78_v25, %v77_v24 }
  0x26   :  { %56 = vadd.xlane.f32.xlu0 %v55_v26 }
  0x27   :  { %v81_v29 = vadd.f32 %v80_v27, %v79_v28 }
  0x2a   :  { %82 = vadd.xlane.f32.xlu0 %v81_v29 }
  0xaf   :  { %v57_v30 = vpop.xlane.xlu0 %56 }
  0xb0   :  { %v58_v31 = vrot.slane %v57_v30, 4 }
  0xb2   :  { %v59_v32 = vadd.f32 %v58_v31, %v57_v30 }
  0xb3   :  { %v83_v33 = vpop.xlane.xlu0 %82 }
  0xb4   :  { %v60_v34 = vrot.slane %v59_v32, 2  ;;  %v84_v35 = vrot.slane %v83_v33, 4 }
  0xb6   :  { %v85_v36 = vadd.f32 %v84_v35, %v83_v33  ;;  %v61_v37 = vadd.f32 %v60_v34, %v59_v32 }
  0xb8   :  { %v86_v38 = vrot.slane %v85_v36, 2  ;;  %v62_v39 = vrot.slane %v61_v37, 1 }
  0xba   :  { %v87_v40 = vadd.f32 %v86_v38, %v85_v36  ;;  %v63_v41 = vadd.f32 %v62_v39, %v61_v37 }
  0xbc   :  { %108 = vpush %v63_v41  ;;  %v88_v42 = vrot.slane %v87_v40, 1 }
  0xbe   :  { %v89_v43 = vadd.f32 %v88_v42, %v87_v40 }
  0xc0   :  { %110 = vpush %v89_v43 }
  0xed   :  { %s109_s0 = spop %108 }
  0xee   :  { %66 = sst [smem:[#allocation7]] %s109_s0 }
  0xf1   :  { %s111_s1 = spop %110 }
  0xf2   :  { %92 = sst [smem:[#allocation7 + $0x1]] %s111_s1 }
  0xf3   :  { %100 = dma.smem_to_hbm %s175_s21, 16, %s210_s2, [#allocation4]  }
  0xf4   :  { %169 = dma.done.wait [#allocation4], 16  }
  0xf5   :  { %170 = vsyncadd [#allocation4], 4294967280 }
  0xf6   :  { %104 = sfence }
  0xf7   :  { %105 = vsyncpa [#allocation3], 1 }
  0xf8   :  { %106 = vsyncpa [#allocation6], 1 }
  0xf9   :  { %107 = vsyncpa [#allocation4], 1 }

</bundles_post_ra>
